<compile_context>
chip_gen: v5e
topology: v5e:2x2
jax: 0.10.0
libtpu: 0.0.40
codegen_flags: <defaults>
</compile_context>

<pallas_src>
import jax
import jax.numpy as jnp
from jax.experimental import pallas as pl
from jax.experimental.pallas import tpu as pltpu


def _hypernet_fused_kernel(x_ref, w_ref, b_ref, weight_out_ref, bias_out_ref):
    # One MXU matmul + one VPU bias add, everything resident in VMEM.
    # x: (B, E), w: (E, 2D), b: (1, 2D)  ->  fused: (B, 2D) in f32.
    D = weight_out_ref.shape[1]
    fused = (
        jnp.dot(x_ref[...], w_ref[...], preferred_element_type=jnp.float32)
        + b_ref[...]
    )
    # Split inside the kernel: avoids unaligned (lane-64) XLA slices / extra
    # launches after the call.  Each half-write is a single masked vst.
    weight_out_ref[...] = fused[:, :D].astype(weight_out_ref.dtype)
    bias_out_ref[...] = fused[:, D:].astype(bias_out_ref.dtype)


def fuse_hypernet_params(wg_w, wg_b, bg_w, bg_b):
    """Fuse the two nn.Linear parameter sets into one (E, 2D) / (1, 2D) pair.

    wg_w / bg_w: (E, D) pre-transposed nn.Linear weights.
    wg_b / bg_b: (1, D) biases.
    Call this ONCE at parameter-setup time.
    """
    w_fused = jnp.concatenate([wg_w, bg_w], axis=1)   # (E, 2D)
    b_fused = jnp.concatenate([wg_b, bg_b], axis=1)   # (1, 2D)
    return w_fused, b_fused


def layernorm_hypernet(x, w_fused, b_fused, input_dim):
    """x: (B, E); w_fused: (E, 2D); b_fused: (1, 2D) -> ((B, D), (B, D))."""
    B, E = x.shape
    D2 = w_fused.shape[1]
    if D2 != 2 * input_dim:
        raise ValueError(
            f"w_fused last dim ({D2}) must equal 2 * input_dim ({2 * input_dim})"
        )

    vmem_spec = pl.BlockSpec(memory_space=pltpu.MemorySpace.VMEM)

    bytes_per = jnp.dtype(x.dtype).itemsize
    cost = pl.CostEstimate(
        flops=2 * B * E * D2,
        transcendentals=0,
        bytes_accessed=(B * E + E * D2 + D2 + B * D2) * bytes_per,
    )

    weight_out, bias_out = pl.pallas_call(
        _hypernet_fused_kernel,
        out_shape=(
            jax.ShapeDtypeStruct((B, input_dim), x.dtype),
            jax.ShapeDtypeStruct((B, input_dim), x.dtype),
        ),
        in_specs=[vmem_spec, vmem_spec, vmem_spec],
        out_specs=(vmem_spec, vmem_spec),
        cost_estimate=cost,
    )(x, w_fused, b_fused)

    return weight_out, bias_out


if __name__ == "__main__":
    # config.task_embedding_size = 32, input_dim = 64, batch of task embeddings = 8
    B, E, D = 8, 32, 64
    key = jax.random.PRNGKey(0)
    k_x, k_wg, k_bg, k_wgb, k_bgb = jax.random.split(key, 5)

    x = jax.random.normal(k_x, (B, E), dtype=jnp.float32)
    # "nn.Linear"-style params stored pre-transposed as (E, D).
    wg_w = jax.random.normal(k_wg, (E, D), dtype=jnp.float32) * 0.05
    bg_w = jax.random.normal(k_bg, (E, D), dtype=jnp.float32) * 0.05
    wg_b = jax.random.normal(k_wgb, (1, D), dtype=jnp.float32) * 0.01
    bg_b = jax.random.normal(k_bgb, (1, D), dtype=jnp.float32) * 0.01

    # Parameter fusion happens once, at setup time.
    w_fused, b_fused = fuse_hypernet_params(wg_w, wg_b, bg_w, bg_b)
    w_fused, b_fused = jax.block_until_ready((w_fused, b_fused))

    w_out, b_out = layernorm_hypernet(x, w_fused, b_fused, D)
    jax.block_until_ready((w_out, b_out))

    # Reference check against plain JAX (original two-Linear semantics).
    w_ref = x @ wg_w + wg_b
    b_ref = x @ bg_w + bg_b
    assert w_out.shape == (B, D) and b_out.shape == (B, D)
    assert jnp.allclose(w_out, w_ref, atol=1e-5, rtol=1e-5)
    assert jnp.allclose(b_out, b_ref, atol=1e-5, rtol=1e-5)

    print("KERNEL_OK")
</pallas_src>

<mosaic_0001>
module attributes {stable_mosaic.version = 11 : i64} {
  func.func @_hypernet_fused_kernel(%arg0: memref<8x32xf32, #tpu.memory_space<vmem>>, %arg1: memref<32x128xf32, #tpu.memory_space<vmem>>, %arg2: memref<1x128xf32, #tpu.memory_space<vmem>>, %arg3: memref<8x64xf32, #tpu.memory_space<vmem>>, %arg4: memref<8x64xf32, #tpu.memory_space<vmem>>) attributes {dimension_semantics = [], scalar_prefetch = 0 : i64, scratch_operands = 0 : i64, tpu.core_type = #tpu.core_type<tc>} {
    %c0 = arith.constant 0 : index
    %c0_0 = arith.constant 0 : index
    %0 = vector.load %arg0[%c0, %c0_0] : memref<8x32xf32, #tpu.memory_space<vmem>>, vector<8x32xf32>
    %c0_1 = arith.constant 0 : index
    %c0_2 = arith.constant 0 : index
    %1 = vector.load %arg1[%c0_1, %c0_2] : memref<32x128xf32, #tpu.memory_space<vmem>>, vector<32x128xf32>
    %cst = arith.constant dense<0.000000e+00> : vector<8x128xf32>
    %2 = tpu.matmul %0, %1, %cst {dimension_numbers = #tpu.dot_dimension_numbers<[1], [0], [0], [1], [0, 0, 1, 1], [], []>} : vector<8x32xf32>, vector<32x128xf32>, vector<8x128xf32> -> vector<8x128xf32>
    %c0_3 = arith.constant 0 : index
    %c0_4 = arith.constant 0 : index
    %3 = vector.load %arg2[%c0_3, %c0_4] : memref<1x128xf32, #tpu.memory_space<vmem>>, vector<1x128xf32>
    %4 = vector.broadcast %3 : vector<1x128xf32> to vector<8x128xf32>
    %5 = arith.addf %2, %4 : vector<8x128xf32>
    %6 = vector.extract_strided_slice %5 {offsets = [0, 0], sizes = [8, 64], strides = [1, 1]} : vector<8x128xf32> to vector<8x64xf32>
    %c0_5 = arith.constant 0 : index
    %c0_6 = arith.constant 0 : index
    %7 = vector.load %arg3[%c0_5, %c0_6] : memref<8x64xf32, #tpu.memory_space<vmem>>, vector<8x64xf32>
    tpu.vector_store %arg3[%c0_5, %c0_6], %6 {strides = array<i32>} : memref<8x64xf32, #tpu.memory_space<vmem>>, vector<8x64xf32>,
    %8 = vector.extract_strided_slice %5 {offsets = [0, 64], sizes = [8, 64], strides = [1, 1]} : vector<8x128xf32> to vector<8x64xf32>
    %c0_7 = arith.constant 0 : index
    %c0_8 = arith.constant 0 : index
    %9 = vector.load %arg4[%c0_7, %c0_8] : memref<8x64xf32, #tpu.memory_space<vmem>>, vector<8x64xf32>
    tpu.vector_store %arg4[%c0_7, %c0_8], %8 {strides = array<i32>} : memref<8x64xf32, #tpu.memory_space<vmem>>, vector<8x64xf32>,
    return
  }
}

</mosaic_0001>

<bundles_post_ra>
// kernel: tpu_custom_call.1
= control target key start
LH: loop header
LB: loop body
LE: loop exit
PB: predicated region body
PF: predicated region fallthrough
CT: control target
= control target key end

     0   :  { %10 = vsyncpa [#allocation3], 0  ;;  %s282_s0 = inlined_call_operand.hbm [shape: f32[8,32], index: 0, kind: input, shape index: {}]   ;;  %s283_s1 = inlined_call_operand.hbm [shape: f32[32,128], index: 1, kind: input, shape index: {}]   ;;  %s284_s2 = inlined_call_operand.vmem [shape: f32[1,128], index: 2, kind: input, shape index: {}]   ;;  %s285_s3 = inlined_call_operand.hbm [shape: f32[8,64], index: 3, kind: output, shape index: {0}]   ;;  %s286_s4 = inlined_call_operand.hbm [shape: f32[8,64], index: 4, kind: output, shape index: {1}]  }
   0x1   :  { %11 = vsyncpa [#allocation6], 0 }
   0x2   :  { %12 = vsyncpa [#allocation4], 0 }
   0x3   :  { %13 = vsyncpa [#allocation9], 0  ;;  %s19_s17 = sshll.u32 %s282_s0, 4  ;;  %s235_s18 = smov [#allocation2]   ;;  %s20_s17 = int_to_ptr.hbm [resolvable:$true] %s19_s17 }
   0x4   :  { %s21_s19 = sshll.u32 %s235_s18, 4  ;;  %s29_s22 = sshll.u32 %s283_s1, 4  ;;  %s22_s19 = int_to_ptr.vmem [resolvable:$true] %s21_s19  ;;  %s30_s22 = int_to_ptr.hbm [resolvable:$true] %s29_s22 }
   0x5   :  { %24 = dma.hbm_to_vmem [thread:$0]  %s20_s17, 128, %s22_s19, [#allocation3]  }
   0x6   :  { %s236_s23 = smov [#allocation5]   ;;  %s237_s25 = smov 128  }
   0x7   :  { %s31_s24 = sshll.u32 %s236_s23, 4  ;;  %s238_s26 = smov 8   ;;  %s32_s24 = int_to_ptr.vmem [resolvable:$true] %s31_s24 }
   0x8   :  { %37 = dma.hbm_to_vmem [thread:$0]  %s30_s22, 512, %s32_s24, [#allocation6], %s237_s25, %s237_s25, %s238_s26  }
   0x9   :  { %227 = dma.done.wait [#allocation3], 128  }
   0xa   :  { %228 = vsyncadd [#allocation3], 4294967168 }
   0xb   :  { %229 = dma.done.wait [#allocation6], 512  }
   0xc   :  { %230 = vsyncadd [#allocation6], 4294966784  ;;  %v52_v0 = vld [vmem:[#allocation5 + $0x18] sm:$0xff]  ;;  %v51_v1 = vld [vmem:[#allocation5 + $0x10] sm:$0xff]  ;;  %vm57_vm0 = vcmask 261120   ;;  %s239_s27 = smov [#allocation7]  }
   0xd   :  { %73 = vmatpush.msra.mxu0 %v52_v0  ;;  %v50_v2 = vld [vmem:[#allocation5 + $0x8] sm:$0xff]  ;;  %v49_v3 = vld [vmem:[#allocation5] sm:$0xff]  ;;  %v48_v4 = vld [vmem:[#allocation2] sm:$0xff]  ;;  %s93_s28 = sshll.u32 %s239_s27, 4  ;;  %s95_s5 = sshll.u32 %s285_s3, 4  ;;  %vm81_vm1 = vcmask 523264   ;;  %s94_s28 = int_to_ptr.vmem [resolvable:$true] %s93_s28  ;;  %s96_s5 = int_to_ptr.hbm [resolvable:$true] %s95_s5 }
   0xe   :  { %v130_v5 = vld [vmem:[%s284_s2] ss:$0 sm:$0xff]  ;;  %s240_s6 = smov 64   ;;  %s241_s7 = smov [#allocation8]  }
   0xf   :  { %74 = vmatpush.msra.mxu0 %v51_v1  ;;  %s104_s8 = sshll.u32 %s241_s7, 4  ;;  %s106_s2 = sshll.u32 %s286_s4, 4  ;;  %s105_s8 = int_to_ptr.vmem [resolvable:$true] %s104_s8  ;;  %s107_s2 = int_to_ptr.hbm [resolvable:$true] %s106_s2 }
  0x11   :  { %75 = vmatpush.msra.mxu0 %v50_v2 }
  0x13   :  { %76 = vmatpush.msra.mxu0 %v49_v3 }
  0x14   :  { %122 = vmatmul.msk.f32.vlgmr.msra.gmra.mxu0 %vm57_vm0, %v48_v4 }
  0x91   :  { %v78_v6 = vpop.f32.mrf.mxu0 }
  0x92   :  { %v79_v7 = vadd.f32 %v130_v5, %v78_v6 }
  0x94   :  { %84 = vrot.lane.b32.xlu0 %v79_v7, %s240_s6  ;;  %82 = vst.msk [vmem:[#allocation7] sm:$0xff] %vm81_vm1, %v79_v7 }
  0x95   :  { %98 = dma.vmem_to_hbm [thread:$0]  %s94_s28, 128, %s96_s5, [#allocation4]  }
 0x106   :  { %v85_v8 = vpop.permute.xlu0 %84 }
 0x107   :  { %87 = vst.msk [vmem:[#allocation8] sm:$0xff] %vm81_vm1, %v85_v8 }
 0x108   :  { %109 = dma.vmem_to_hbm [thread:$0]  %s105_s8, 128, %s107_s2, [#allocation9]  }
 0x109   :  { %231 = dma.done.wait [#allocation4], 128  }
 0x10a   :  { %232 = vsyncadd [#allocation4], 4294967168 }
 0x10b   :  { %233 = dma.done.wait [#allocation9], 128  }
 0x10c   :  { %234 = vsyncadd [#allocation9], 4294967168 }
 0x10d   :  { %118 = vsyncpa [#allocation3], 1 }
 0x10e   :  { %119 = vsyncpa [#allocation6], 1 }
 0x10f   :  { %120 = vsyncpa [#allocation4], 1 }
 0x110   :  { %121 = vsyncpa [#allocation9], 1 }

</bundles_post_ra>
